<compile_context>
chip_gen: v7x
topology: tpu7x:2x2x1
jax: 0.10.0
libtpu: 0.0.40
codegen_flags: <defaults>
</compile_context>

<pallas_src>
import functools

import jax
import jax.numpy as jnp
from jax.experimental import pallas as pl
from jax.experimental.pallas import tpu as pltpu


# ---------------------------------------------------------------------------
# Fused kernel: one grid step = `bb` batch elements, ALL nodes.
#   adj_ref : (N_pad, N_pad)      time * sigmoid(alpha)/2 * adj   (resident, constant idx)
#   x_ref   : (bb, N_pad, TF)     batch block of the input slab
#   m_ref   : (TF, TF)            time*(kron(I_T,W)+kron(W2,I_F)) + (1-2*time)*I (resident)
#   o_ref   : (bb, N_pad, TF)     relu(adj_t @ x + x @ Mc)
# ---------------------------------------------------------------------------
def odeg_kernel(adj_ref, x_ref, m_ref, o_ref, *, bb):
    adj = adj_ref[...]
    m = m_ref[...]
    # bb is small and static -> unrolled; each iteration is two N_pad-row MXU matmuls.
    for b in range(bb):
        xb = x_ref[b]                                                   # (N_pad, TF)
        agg = jnp.dot(adj, xb, preferred_element_type=jnp.float32)      # graph aggregation
        mix = jnp.dot(xb, m, preferred_element_type=jnp.float32)        # feat+time mix (+ cI)
        o_ref[b] = jnp.maximum(agg + mix, 0.0).astype(o_ref.dtype)


def _round_up(v, m):
    return ((v + m - 1) // m) * m


def _pick_batch_block(B, per_batch_bytes):
    """Batch elements per grid step: big enough to consolidate work, but keep
    >= 2 parallel grid steps (v7x megacore) and each block <= ~8 MiB."""
    cap = max(1, (8 << 20) // max(per_batch_bytes, 1))
    bb = min(B, cap)
    if B % 2 == 0:                     # keep an even, >=2 step count when possible
        bb = min(bb, B // 2)
    while B % bb:                      # bb must divide B
        bb -= 1
    return max(bb, 1)


# ---------------------------------------------------------------------------
# Wrapper: tiny parameter prep / reshapes are plain-JAX glue, hot path is one Pallas call.
# NOTE: `time` is a constructor constant of ODEG, so baking it in (Python float) is
# semantically faithful; a traced `time` would need SMEM/scalar-prefetch plumbing.
# ---------------------------------------------------------------------------
def odeg_forward(x, adj, alpha, w, d, w2, d2, time, *, batch_block=None):
    B, N, T, F = x.shape
    TF = T * F
    t = float(time)

    # ---- parameter prep (mirrors ODEFunc.forward's prep, with the Euler step folded in) --
    a_half = jax.nn.sigmoid(alpha) * 0.5                        # (N,)
    adj_t = (t * a_half)[:, None] * adj                         # time * alpha/2 folded in rows
    W = (w * jnp.clip(d, 0.0, 1.0)) @ w.T                       # (F, F)
    W2 = (w2 * jnp.clip(d2, 0.0, 1.0)) @ w2.T                   # (T, T)
    # Combined mixing matrix on the flattened (T*F) axis, Euler residual on the diagonal:
    #   (x @ Mc)[n, t*F+f] = time*(sum_l x[n,t,l] W[l,f] + sum_k x[n,k,f] W2[k,t])
    #                        + (1 - 2*time) * x[n,t,f]
    Mc = t * (jnp.kron(jnp.eye(T, dtype=jnp.float32), W)
              + jnp.kron(W2, jnp.eye(F, dtype=jnp.float32)))
    Mc = Mc + (1.0 - 2.0 * t) * jnp.eye(TF, dtype=jnp.float32)  # (TF, TF)

    # ---- pad nodes to a multiple of 8 for clean sublane tiling (real graphs: 207..325) --
    N_pad = _round_up(N, 8)
    x2 = x.reshape(B, N, TF)                                    # lane-dense view
    if N_pad != N:
        pad = N_pad - N
        x2 = jnp.pad(x2, ((0, 0), (0, pad), (0, 0)))
        adj_t = jnp.pad(adj_t, ((0, pad), (0, pad)))            # zero rows/cols: no leakage

    per_batch_bytes = N_pad * TF * 4
    if batch_block is None:
        batch_block = _pick_batch_block(B, per_batch_bytes)
    assert B % batch_block == 0, "batch_block must divide B"
    nb = B // batch_block

    # ---- scheduling hints -------------------------------------------------------------
    flops = 2 * B * N_pad * TF * (N_pad + TF)
    bytes_accessed = 4 * (2 * B * N_pad * TF + N_pad * N_pad + TF * TF)
    cost = pl.CostEstimate(flops=flops, transcendentals=0, bytes_accessed=bytes_accessed)

    block_bytes = batch_block * per_batch_bytes
    vmem_need = 4 * block_bytes + 8 * 4 * 0 + 8 * (N_pad * N_pad + TF * TF) + (4 << 20)
    vmem_limit = int(min(64 << 20, max(32 << 20, vmem_need)))   # 64 MiB cap: safe on v7x too

    out = pl.pallas_call(
        functools.partial(odeg_kernel, bb=batch_block),
        out_shape=jax.ShapeDtypeStruct((B, N_pad, TF), x.dtype),
        grid_spec=pltpu.PrefetchScalarGridSpec(
            num_scalar_prefetch=0,
            grid=(nb,),
            in_specs=[
                # adj_t: constant block index -> DMA'd once, resident in VMEM.
                pl.BlockSpec((N_pad, N_pad), lambda i: (0, 0)),
                # batch block of the input slab (full node dim, lane-dense TF).
                pl.BlockSpec((batch_block, N_pad, TF), lambda i: (i, 0, 0)),
                # combined mixing matrix: constant block index -> resident.
                pl.BlockSpec((TF, TF), lambda i: (0, 0)),
            ],
            out_specs=pl.BlockSpec((batch_block, N_pad, TF), lambda i: (i, 0, 0)),
        ),
        compiler_params=pltpu.CompilerParams(
            dimension_semantics=("parallel",),
            vmem_limit_bytes=vmem_limit,
        ),
        cost_estimate=cost,
    )(adj_t.astype(x.dtype), x2, Mc.astype(x.dtype))

    return out[:, :N, :].reshape(B, N, T, F)


# ---------------------------------------------------------------------------
# Pure-JAX reference (mirrors the PyTorch code line by line) for verification.
# ---------------------------------------------------------------------------
def odeg_reference(x, adj, alpha, w, d, w2, d2, time):
    a = jax.nn.sigmoid(alpha)[None, :, None, None]
    xa = jnp.einsum("ij,kjlm->kilm", adj, x)
    W = (w * jnp.clip(d, 0.0, 1.0)) @ w.T
    xw = jnp.einsum("ijkl,lm->ijkm", x, W)
    W2 = (w2 * jnp.clip(d2, 0.0, 1.0)) @ w2.T
    xw2 = jnp.einsum("ijkl,km->ijml", x, W2)
    x0 = x
    f = a / 2.0 * xa - x + xw - x + xw2 - x + x0
    z = x + time * f                     # single Euler step of odeint(t=[0, time])
    return jax.nn.relu(z)


if __name__ == "__main__":
    key = jax.random.PRNGKey(0)
    B, N, T, F = 2, 16, 8, 32            # batch, num_nodes, temporal_dim, feature_dim
    time_val = 6.0

    ks = jax.random.split(key, 8)
    x = jax.random.normal(ks[0], (B, N, T, F), dtype=jnp.float32)

    # Deterministic normalized adjacency (constructor argument of ODEFunc).
    a_raw = jax.random.uniform(ks[1], (N, N), dtype=jnp.float32)
    a_sym = 0.5 * (a_raw + a_raw.T) + jnp.eye(N, dtype=jnp.float32)
    dinv = 1.0 / jnp.sqrt(jnp.sum(a_sym, axis=1))
    adj = dinv[:, None] * a_sym * dinv[None, :]

    # Parameters: __init__ values (0.8*ones / eye / ones) plus a small
    # deterministic perturbation so the test path is non-degenerate.
    alpha = 0.8 * jnp.ones((N,), jnp.float32) + 0.05 * jax.random.normal(ks[2], (N,))
    w = jnp.eye(F, dtype=jnp.float32) + 0.02 * jax.random.normal(ks[3], (F, F))
    d = jnp.ones((F,), jnp.float32) + 0.2 * jax.random.normal(ks[4], (F,))
    w2 = jnp.eye(T, dtype=jnp.float32) + 0.02 * jax.random.normal(ks[5], (T, T))
    d2 = jnp.ones((T,), jnp.float32) + 0.2 * jax.random.normal(ks[6], (T,))

    out = odeg_forward(x, adj, alpha, w, d, w2, d2, time_val)
    out = jax.block_until_ready(out)

    ref = odeg_reference(x, adj, alpha, w, d, w2, d2, time_val)
    assert out.shape == x.shape and out.dtype == x.dtype
    max_err = float(jnp.max(jnp.abs(out - ref)))
    assert jnp.allclose(out, ref, atol=1e-4, rtol=1e-4), f"max_err={max_err}"
    print("KERNEL_OK")
</pallas_src>

<mosaic_0001>
module attributes {stable_mosaic.version = 11 : i64} {
  func.func @odeg_kernel(%arg0: i32, %arg1: memref<16x16xf32, #tpu.memory_space<vmem>>, %arg2: memref<1x16x256xf32, #tpu.memory_space<vmem>>, %arg3: memref<256x256xf32, #tpu.memory_space<vmem>>, %arg4: memref<1x16x256xf32, #tpu.memory_space<vmem>>) attributes {dimension_semantics = [#tpu.dimension_semantics<parallel>], iteration_bounds = array<i64: 2>, scalar_prefetch = 0 : i64, scratch_operands = 0 : i64, tpu.core_type = #tpu.core_type<tc>, window_params = [{pipeline_mode = #tpu.pipeline_mode<synchronous>, transform_indices = @transform_0, window_bounds = array<i64: 16, 16>}, {transform_indices = @transform_1, window_bounds = array<i64: 1, 16, 256>}, {pipeline_mode = #tpu.pipeline_mode<synchronous>, transform_indices = @transform_2, window_bounds = array<i64: 256, 256>}, {transform_indices = @transform_3, window_bounds = array<i64: 1, 16, 256>}]} {
    %c0 = arith.constant 0 : index
    %c0_0 = arith.constant 0 : index
    %0 = vector.load %arg1[%c0, %c0_0] : memref<16x16xf32, #tpu.memory_space<vmem>>, vector<16x16xf32>
    %c0_1 = arith.constant 0 : index
    %c0_2 = arith.constant 0 : index
    %1 = vector.load %arg3[%c0_1, %c0_2] : memref<256x256xf32, #tpu.memory_space<vmem>>, vector<256x256xf32>
    %c0_3 = arith.constant 0 : index
    %c0_4 = arith.constant 0 : index
    %c0_5 = arith.constant 0 : index
    %2 = vector.load %arg2[%c0_3, %c0_4, %c0_5] : memref<1x16x256xf32, #tpu.memory_space<vmem>>, vector<1x16x256xf32>
    %3 = vector.shape_cast %2 : vector<1x16x256xf32> to vector<16x256xf32>
    %cst = arith.constant dense<0.000000e+00> : vector<16x256xf32>
    %4 = tpu.matmul %0, %3, %cst {dimension_numbers = #tpu.dot_dimension_numbers<[1], [0], [0], [1], [0, 0, 1, 1], [], []>} : vector<16x16xf32>, vector<16x256xf32>, vector<16x256xf32> -> vector<16x256xf32>
    %cst_6 = arith.constant dense<0.000000e+00> : vector<16x256xf32>
    %5 = tpu.matmul %3, %1, %cst_6 {dimension_numbers = #tpu.dot_dimension_numbers<[1], [0], [0], [1], [0, 0, 1, 1], [], []>} : vector<16x256xf32>, vector<256x256xf32>, vector<16x256xf32> -> vector<16x256xf32>
    %6 = arith.addf %4, %5 : vector<16x256xf32>
    %cst_7 = arith.constant 0.000000e+00 : f32
    %7 = vector.broadcast %cst_7 : f32 to vector<16x256xf32>
    %8 = arith.maximumf %6, %7 : vector<16x256xf32>
    %c0_8 = arith.constant 0 : index
    %c0_9 = arith.constant 0 : index
    %c0_10 = arith.constant 0 : index
    %9 = vector.load %arg4[%c0_8, %c0_9, %c0_10] : memref<1x16x256xf32, #tpu.memory_space<vmem>>, vector<1x16x256xf32>
    %10 = vector.shape_cast %9 : vector<1x16x256xf32> to vector<16x256xf32>
    %11 = vector.shape_cast %8 : vector<16x256xf32> to vector<1x16x256xf32>
    tpu.vector_store %arg4[%c0_8, %c0_9, %c0_10], %11 {strides = array<i32>} : memref<1x16x256xf32, #tpu.memory_space<vmem>>, vector<1x16x256xf32>,
    return
  }
  func.func @transform_0(%arg0: i32) -> (i32, i32) {
    %c0_i32 = arith.constant 0 : i32
    %c0_i32_0 = arith.constant 0 : i32
    %c0_i32_1 = arith.constant 0 : i32
    return %c0_i32, %c0_i32_0 : i32, i32
  }
  func.func @transform_1(%arg0: i32) -> (i32, i32, i32) {
    %c0_i32 = arith.constant 0 : i32
    %c0_i32_0 = arith.constant 0 : i32
    %c0_i32_1 = arith.constant 0 : i32
    return %arg0, %c0_i32, %c0_i32_0 : i32, i32, i32
  }
  func.func @transform_2(%arg0: i32) -> (i32, i32) {
    %c0_i32 = arith.constant 0 : i32
    %c0_i32_0 = arith.constant 0 : i32
    %c0_i32_1 = arith.constant 0 : i32
    return %c0_i32, %c0_i32_0 : i32, i32
  }
  func.func @transform_3(%arg0: i32) -> (i32, i32, i32) {
    %c0_i32 = arith.constant 0 : i32
    %c0_i32_0 = arith.constant 0 : i32
    %c0_i32_1 = arith.constant 0 : i32
    return %arg0, %c0_i32, %c0_i32_0 : i32, i32, i32
  }
}

</mosaic_0001>

<bundles_post_ra>
// kernel: tpu_custom_call.1
= control target key start
LH: loop header
LB: loop body
LE: loop exit
PB: predicated region body
PF: predicated region fallthrough
CT: control target
= control target key end

     0   :  { %8 = vsyncpa [#allocation3], 0  ;;  %s1190_s0 = inlined_call_operand.hbm [shape: f32[16,16], index: 0, kind: input, shape index: {}]   ;;  %s1191_s1 = inlined_call_operand.hbm [shape: f32[2,16,256], index: 1, kind: input, shape index: {}]   ;;  %s1192_s2 = inlined_call_operand.hbm [shape: f32[256,256], index: 2, kind: input, shape index: {}]   ;;  %s1193_s3 = inlined_call_operand.hbm [shape: f32[2,16,256], index: 3, kind: output, shape index: {}]  }
   0x1   :  { %9 = vsyncpa [#allocation6], 0 }
   0x2   :  { %11 = vsyncpa [#allocation6 + $0x1], 0 }
   0x3   :  { %12 = vsyncpa [#allocation4], 0 }
   0x4   :  { %14 = vsyncpa [#allocation4 + $0x1], 0  ;;  %s926_s12 = smov 0   ;;  %s928_s13 = smov 0  }
   0x5   :  { %s930_s14 = smov 0   ;;  %s932_s15 = smov 0  }
   0x6 LB: > { %s947_s16 = sadd.s32 4294967295, %s893_s15   ;;  %s565_s17 = sadd.s32 4294967294, %s893_s15   ;;  %s893_s15 = sphi %s932_s15, %s1225_s15   ;;  %s889_s14 = sphi %s930_s14, %s1224_s14   ;;  %s885_s13 = sphi %s928_s13, %s1223_s13   ;;  %s881_s12 = sphi %s926_s12, %s1222_s12  }
   0x7   : > { %s951_s18 = sadd.s32 1, %s893_s15   ;;  %s48_s19 = sadd.s32 1, %s889_s14 }
   0x8   : > { %s45_s20 = ssub.s32 %s893_s15, %s951_s18  ;;  %p55_p0 = scmp.ne.s32.totalorder %s889_s14, %s885_s13 }
   0x9   : > { %p46_p1 = scmp.eq.s32.totalorder %s45_s20, 0  ;;  %p56_p2 = scmp.eq.s32.totalorder %s893_s15, 0 }
   0xa   : > { %p61_p3 = scmp.ne.s32.totalorder %s885_s13, %s881_s12  ;;  %p1194_p4 = scmp.eq.s32.totalorder %s947_s16, 0 }
   0xb   : > { %s963_s21 = scalar_select %p46_p1, %s889_s14, %s48_s19  }
   0xc   : > { %p965_p5 = por %p56_p2, %p55_p0  ;;  %p971_p6 = por %p1194_p4, %p61_p3 }
   0xd   : > { %p106_p7 = scmp.eq.s32.totalorder %s947_s16, 1  ;;  %p112_p8 = scmp.eq.s32.totalorder %s565_s17, 1 }
   0xe   : > { %s1201_s22 = scalar_select %p965_p5, 1, 0 }
   0xf   : > { %s1202_s23 = scalar_select %p971_p6, 1, 0 }
  0x10   : > { %p566_p9 = scmp.ge.s32.totalorder %s893_s15, 1  ;;  %p119_p10 = scmp.lt.s32.totalorder %s893_s15, 3 }
  0x11   : > { %p978_p11 = por %p106_p7, %p55_p0  ;;  %p982_p12 = por %p112_p8, %p61_p3 }
  0x12   : > { %p986_p13 = pnand %p566_p9, %p119_p10  ;;  %s895_s27 = smov [#allocation7]  }
  0x13   : > { %s1203_s24 = scalar_select %p978_p11, 1, 0 }
  0x14   : > { %s1204_s25 = scalar_select %p982_p12, 1, 0 }
  0x15   : > { %s1205_s26 = scalar_select %p986_p13, 1, 0 }
  0x16   : > { %p671_p1 = pneg %p986_p13  ;;  %s144_s28 = sshll.u32 %s895_s27, 4  ;;  %s145_s28 = int_to_ptr.vmem [resolvable:$true] %s144_s28 }
  0x17   : > { %s896_s30 = smov [#allocation2]   ;;  %s733_s7 = scalar_lea.hbm %s1192_s2, 8192 }
  0x18   : > { %p994_p2 = pnand %p671_p1, %p1194_p4  ;;  %s131_s4 = sshll.u32 %s896_s30, 4  ;;  %s132_s4 = int_to_ptr.vmem [resolvable:$true] %s131_s4 }
  0x19   : > { %p734_p7 = scmp.ne.s32.totalorder %s1192_s2, %s733_s7  ;;  %p740_p1 = scmp.lt.u32.totalorder %s733_s7, %s1192_s2 }
  0x1a   : > { %p735_p8 = pneg %p994_p2 }
  0x1c   : > { %p736_p9 = pnand %p735_p8, %p734_p7 }
  0x1e   : > { %p737_p10 = pneg %p736_p9 }
  0x20   : > { %p742_p0 = pnand %p740_p1, %p737_p10 }
  0x22   : > { %745 = shalt.err (!%p742_p0)
}
  0x23   : > { %s746_s17 = scalar_lea.vmem %s145_s28, 8192  ;;  %p754_p11 = scmp.lt.s32.totalorder %s145_s28, %s145_s28 }
  0x24   : > { %p747_p4 = scmp.ne.s32.totalorder %s145_s28, %s746_s17  ;;  %p755_p6 = scmp.lt.s32.totalorder %s746_s17, %s746_s17 }
  0x26   : > { %p749_p3 = pnand %p747_p4, %p735_p8  ;;  %p756_p13 = por %p755_p6, %p754_p11 }
  0x28   : > { %p750_p12 = pneg %p749_p3 }
  0x2a   : > { %p757_p5 = pnand %p756_p13, %p750_p12 }
  0x2c   : > { %760 = shalt.err (!%p757_p5)
}
  0x2d   : > { %s1199_s19 = smov 256   ;;  %s1200_s20 = smov 16  }
  0x2e   : > { %677 = dma.hbm_to_vmem [thread:$0]  (!%p994_p2), %s1192_s2, 8192, %s145_s28, [#allocation6], %s1199_s19, %s1199_s19, %s1200_s20  }
  0x2f   : > { %p1207_p4 = scmp.ne.s32.totalorder %s1201_s22, 0  ;;  %p1208_p0 = scmp.lt.s32.totalorder %s893_s15, 2 }
  0x30   : > { %s158_s6 = sand.u32 1, %s893_s15   ;;  %s761_s9 = scalar_lea.hbm %s1190_s0, 256 }
  0x31   : > { %p1029_p6 = pnand %p1208_p0, %p1207_p4  ;;  %p762_p5 = scmp.ne.s32.totalorder %s1190_s0, %s761_s9 }
  0x32   : > { %p768_p13 = scmp.lt.u32.totalorder %s761_s9, %s1190_s0 }
  0x33   : > { %s1209_s5 = scalar_select %p1029_p6, 1, 0 }
  0x34   : > { %p764_p11 = pnand %p762_p5, %p735_p8 }
  0x36   : > { %p765_p12 = pneg %p764_p11 }
  0x38   : > { %p770_p3 = pnand %p768_p13, %p765_p12 }
  0x3a   : > { %773 = shalt.err (!%p770_p3)
}
  0x3b   : > { %s774_s17 = scalar_lea.vmem %s132_s4, 256  ;;  %p782_p1 = scmp.lt.s32.totalorder %s132_s4, %s132_s4 }
  0x3c   : > { %p775_p7 = scmp.ne.s32.totalorder %s132_s4, %s774_s17  ;;  %p783_p4 = scmp.lt.s32.totalorder %s774_s17, %s774_s17 }
  0x3e   : > { %p777_p9 = pnand %p775_p7, %p735_p8  ;;  %p784_p0 = por %p783_p4, %p782_p1 }
  0x40   : > { %p778_p10 = pneg %p777_p9 }
  0x42   : > { %p785_p6 = pnand %p784_p0, %p778_p10 }
  0x44   : > { %788 = shalt.err (!%p785_p6)
}
  0x45   : > { %s899_s27 = smov 128   ;;  %s900_s30 = smov 8  }
  0x46   : > { %674 = dma.hbm_to_vmem [thread:$0]  (!%p994_p2), %s1190_s0, 256, %s132_s4, [#allocation3], %s899_s27, %s899_s27, %s900_s30  }
  0x47   : > { %s160_s9 = sand.u32 1, %s889_s14   ;;  %s585_s11 = sshll.u32 %s893_s15, 9 }
  0x48   : > { %s570_s10 = sshll.u32 %s160_s9, 5  ;;  %s1059_s17 = scalar_lea.hbm %s1191_s1, %s585_s11 }
  0x49   : > { %s162_s19 = scalar_lea.vmem [#allocation5], %s570_s10  ;;  %s1063_s29 = scalar_lea.sflag [#allocation6], %s158_s6 }
  0x4a   : > { %s169_s20 = sshll.u32 %s162_s19, 4  ;;  %s789_s7 = scalar_lea.hbm %s1059_s17, 512  ;;  %s1061_s20 = int_to_ptr.vmem [resolvable:$true] %s169_s20 }
  0x4b   : > { %p790_p2 = scmp.ne.s32.totalorder %s1059_s17, %s789_s7  ;;  %p1210_p8 = scmp.ne.s32.totalorder %s1209_s5, 0 }
  0x4c   : > { %s794_s30 = scalar_lea.hbm %s1191_s1, 1024  ;;  %p795_p12 = scmp.lt.u32.totalorder %s1059_s17, %s1191_s1 }
  0x4d   : > { %p791_p6 = pneg %p1210_p8  ;;  %p796_p13 = scmp.lt.u32.totalorder %s794_s30, %s789_s7 }
  0x4e   : > { %p798_p7 = scmp.lt.u32.totalorder %s789_s7, %s1059_s17 }
  0x4f   : > { %p792_p5 = pnand %p791_p6, %p790_p2  ;;  %p797_p3 = por %p796_p13, %p795_p12 }
  0x51   : > { %p793_p11 = pneg %p792_p5  ;;  %p799_p9 = por %p798_p7, %p797_p3 }
  0x53   : > { %p800_p10 = pnand %p799_p9, %p793_p11 }
  0x55   : > { %803 = shalt.err (!%p800_p10)
}
  0x56   : > { %s804_s19 = scalar_lea.vmem %s1061_s20, 512  ;;  %s901_s6 = smov [#allocation5]  }
  0x57   : > { %p805_p1 = scmp.ne.s32.totalorder %s1061_s20, %s804_s19  ;;  %s809_s10 = sshll.u32 %s901_s6, 4  ;;  %s810_s10 = int_to_ptr.vmem [resolvable:$false] %s809_s10 }
  0x58   : > { %s811_s11 = scalar_lea.vmem %s810_s10, 1024  ;;  %p812_p2 = scmp.lt.s32.totalorder %s1061_s20, %s810_s10 }
  0x59   : > { %p807_p4 = pnand %p805_p1, %p791_p6  ;;  %p813_p5 = scmp.lt.s32.totalorder %s811_s11, %s804_s19 }
  0x5b   : > { %p808_p0 = pneg %p807_p4  ;;  %p814_p12 = por %p813_p5, %p812_p2 }
  0x5d   : > { %p815_p13 = pnand %p814_p12, %p808_p0 }
  0x5f   : > { %818 = shalt.err (!%p815_p13)
}
  0x60   : > { %s1211_s22 = smov 16   ;;  %s1212_s28 = smov 256  }
  0x61   : > { %681 = dma.hbm_to_vmem [thread:$0]  (!%p1210_p8), %s1059_s17, 512, %s1061_s20, %s1063_s29, %s1212_s28, %s1212_s28, %s1211_s22  }
  0x62   : > { %p1213_p6 = scmp.ne.s32.totalorder %s1205_s26, 0 }
  0x63   : > { %p1214_p11 = scmp.eq.s32.totalorder (!%p1213_p6), %s947_s16, 0 }
  0x64   : > { %181 = sbr.rel (%p1213_p6) target bundleno = 419 (0x1a3), region = 32 }
  0x6b   : > { %864 = dma.done.wait (%p1214_p11), [#allocation3], 256   ;;  %p1215_p3 = pmov %p1214_p11 }
  0x6c   : > { %s187_s5 = sand.u32 1, %s947_s16   ;;  %s189_s7 = sand.u32 1, %s885_s13  }
  0x6d   : > { %866 = vsyncadd (%p1215_p3), [#allocation3], 4294967040  ;;  %s1104_s4 = sshll.u32 %s189_s7, 5  ;;  %s188_s20 = scalar_lea.sflag [#allocation6], %s187_s5 }
  0x6e   : > { %s1107_s17 = scalar_lea.vmem [#allocation5], %s1104_s4  ;;  %p1216_p8 = scmp.ne.s32.totalorder %s1202_s23, 0 }
  0x70   : > { %868 = dma.done.wait (%p1216_p8), %s188_s20, 512  }
  0x71   : > { %870 = vsyncadd (%p1216_p8), %s188_s20, 4294966784  ;;  %p1217_p7 = pmov %p1215_p3 }
  0x72   : > { %p1218_p9 = pmov %p1215_p3 }
  0x73   : > { %872 = dma.done.wait (%p1217_p7), [#allocation6], 8192  }
  0x74   : > { %874 = vsyncadd (%p1218_p9), [#allocation6], 4294959104  ;;  %v902_v0 = vmov 0.0   ;;  %v221_v1 = vld [vmem:[#allocation7 + $0x8] sm:$0xff]  ;;  %v223_v2 = vld [vmem:[#allocation7 + $0x18] sm:$0xff]  ;;  %vm365_vm0 = vcmask 130048  }
  0x75   : > { %436 = vmatprep.mubr.f32.mxu0 %v902_v0  ;;  %v220_v3 = vld [vmem:[#allocation7] sm:$0xff]  ;;  %v587_v4 = vpack.c.bf16 %v223_v2, %v221_v1  ;;  %v222_v5 = vld [vmem:[#allocation7 + $0x10] sm:$0xff]  ;;  %v225_v6 = vld [vmem:[#allocation7 + $0x28] sm:$0xff]  ;;  %s217_s23 = scalar_lea.vmem [#allocation8], %s1104_s4  ;;  %s586_s29 = sshll.u32 %s947_s16, 9 }
  0x76   : > { %v227_v7 = vld [vmem:[#allocation7 + $0x38] sm:$0xff]  ;;  %v589_v8 = vpack.c.bf16 %v222_v5, %v220_v3  ;;  %v224_v10 = vld [vmem:[#allocation7 + $0x20] sm:$0xff]  ;;  %v226_v11 = vld [vmem:[#allocation7 + $0x30] sm:$0xff]  ;;  %s471_s26 = sshll.u32 %s217_s23, 4  ;;  %s1144_s8 = scalar_lea.hbm %s1193_s3, %s586_s29  ;;  %s1139_s26 = int_to_ptr.vmem [resolvable:$true] %s471_s26 }
  0x77   : > { %v591_v9 = vpack.c.bf16 %v227_v7, %v225_v6  ;;  %v229_v12 = vld [vmem:[#allocation7 + $0x48] sm:$0xff]  ;;  %588 = vmatprep.subr.bf16.mxu1 %v587_v4  ;;  %v231_v13 = vld [vmem:[#allocation7 + $0x58] sm:$0xff]  ;;  %v593_v14 = vpack.c.bf16 %v226_v11, %v224_v10  ;;  %v228_v16 = vld [vmem:[#allocation7 + $0x40] sm:$0xff]  ;;  %s1148_s16 = scalar_lea.sflag [#allocation4], %s189_s7  ;;  %s819_s9 = scalar_lea.vmem %s1139_s26, 512 }
  0x78   : > { %590 = vmatpush1.bf16.msra.mxu1 %v589_v8  ;;  %v595_v15 = vpack.c.bf16 %v231_v13, %v229_v12  ;;  %v230_v17 = vld [vmem:[#allocation7 + $0x50] sm:$0xff]  ;;  %v233_v18 = vld [vmem:[#allocation7 + $0x68] sm:$0xff]  ;;  %v235_v19 = vld [vmem:[#allocation7 + $0x78] sm:$0xff]  ;;  %p820_p10 = scmp.ne.s32.totalorder %s1139_s26, %s819_s9  ;;  %p1219_p1 = scmp.ne.s32.totalorder %s1203_s24, 0 }
  0x79   : > { %592 = vmatprep.subr.bf16.mxu1 %v591_v9  ;;  %v597_v20 = vpack.c.bf16 %v230_v17, %v228_v16  ;;  %v599_v21 = vpack.c.bf16 %v235_v19, %v233_v18  ;;  %v232_v22 = vld [vmem:[#allocation7 + $0x60] sm:$0xff]  ;;  %v234_v23 = vld [vmem:[#allocation7 + $0x70] sm:$0xff]  ;;  %v237_v24 = vld [vmem:[#allocation7 + $0x88] sm:$0xff]  ;;  %s903_s19 = smov [#allocation8]  }
  0x7a   : > { %v239_v25 = vld [vmem:[#allocation7 + $0x98] sm:$0xff]  ;;  %v601_v26 = vpack.c.bf16 %v234_v23, %v232_v22  ;;  %v236_v28 = vld [vmem:[#allocation7 + $0x80] sm:$0xff]  ;;  %v238_v29 = vld [vmem:[#allocation7 + $0x90] sm:$0xff]  ;;  %p821_p4 = pnand %p820_p10, %p1219_p1  ;;  %s823_s6 = sshll.u32 %s903_s19, 4  ;;  %s824_s6 = int_to_ptr.vmem [resolvable:$false] %s823_s6 }
  0x7b   : > { %v603_v27 = vpack.c.bf16 %v239_v25, %v237_v24  ;;  %v241_v30 = vld [vmem:[#allocation7 + $0xa8] sm:$0xff]  ;;  %v243_v31 = vld [vmem:[#allocation7 + $0xb8] sm:$0xff]  ;;  %v605_v32 = vpack.c.bf16 %v238_v29, %v236_v28  ;;  %v240_v34 = vld [vmem:[#allocation7 + $0xa0] sm:$0xff]  ;;  %s825_s10 = scalar_lea.vmem %s824_s6, 1024  ;;  %p826_p2 = scmp.lt.s32.totalorder %s1139_s26, %s824_s6 }
  0x7c   : > { %594 = vmatpush1.bf16.msra.mxu1 %v593_v14  ;;  %v607_v33 = vpack.c.bf16 %v243_v31, %v241_v30  ;;  %v242_v35 = vld [vmem:[#allocation7 + $0xb0] sm:$0xff]  ;;  %v245_v36 = vld [vmem:[#allocation7 + $0xc8] sm:$0xff]  ;;  %v247_v37 = vld [vmem:[#allocation7 + $0xd8] sm:$0xff]  ;;  %p822_p0 = pneg %p821_p4  ;;  %p827_p5 = scmp.lt.s32.totalorder %s825_s10, %s819_s9 }
  0x7d   : > { %596 = vmatprep.subr.bf16.mxu1 %v595_v15  ;;  %v609_v38 = vpack.c.bf16 %v242_v35, %v240_v34  ;;  %v244_v39 = vld [vmem:[#allocation7 + $0xc0] sm:$0xff]  ;;  %v285_v40 = vld [vmem:[%s1107_s17 + $0x8] sm:$0xff]  ;;  %v1120_v41 = vld [vmem:[%s1107_s17 + $0x18] sm:$0xff]  ;;  %v611_v42 = vpack.c.bf16 %v247_v37, %v245_v36 }
  0x7e   : > { %v246_v43 = vld [vmem:[#allocation7 + $0xd0] sm:$0xff]  ;;  %v651_v44 = vpack.c.bf16 %v1120_v41, %v285_v40  ;;  %v1124_v45 = vld [vmem:[%s1107_s17] sm:$0xff]  ;;  %352 = vmatprep.mubr.f32.mxu1 %v285_v40  ;;  %v249_v47 = vld [vmem:[#allocation7 + $0xe8] sm:$0xff]  ;;  %p828_p12 = por %p827_p5, %p826_p2 }
  0x7f   : > { %v1127_v46 = vld [vmem:[%s1107_s17 + $0x10] sm:$0xff]  ;;  %v251_v48 = vld [vmem:[#allocation7 + $0xf8] sm:$0xff]  ;;  %v613_v50 = vpack.c.bf16 %v246_v43, %v244_v39  ;;  %v248_v53 = vld [vmem:[#allocation7 + $0xe0] sm:$0xff] }
  0x80   : > { %598 = vmatpush1.bf16.msra.mxu1 %v597_v20  ;;  %v653_v49 = vpack.c.bf16 %v1127_v46, %v1124_v45  ;;  %652 = vmatprep.subr.bf16.mxu0 %v651_v44  ;;  %v218_v51 = vld [vmem:[#allocation2] sm:$0xff]  ;;  %v615_v52 = vpack.c.bf16 %v251_v48, %v249_v47  ;;  %v253_v55 = vld [vmem:[#allocation7 + $0x108] sm:$0xff]  ;;  %v255_v56 = vld [vmem:[#allocation7 + $0x118] sm:$0xff]  ;;  %p829_p13 = pnand %p828_p12, %p822_p0 }
  0x81   : > { %600 = vmatprep.subr.bf16.mxu1 %v599_v21  ;;  %v250_v54 = vld [vmem:[#allocation7 + $0xf0] sm:$0xff]  ;;  %v219_v58 = vld [vmem:[#allocation2 + $0x8] sm:$0xff]  ;;  %v619_v59 = vpack.c.bf16 %v255_v56, %v253_v55  ;;  %v252_v60 = vld [vmem:[#allocation7 + $0x100] sm:$0xff] }
  0x82   : > { %654 = vmatpush1.bf16.msra.mxu0 %v653_v49  ;;  %v617_v57 = vpack.c.bf16 %v250_v54, %v248_v53  ;;  %v254_v61 = vld [vmem:[#allocation7 + $0x110] sm:$0xff]  ;;  %v257_v62 = vld [vmem:[#allocation7 + $0x128] sm:$0xff]  ;;  %v259_v63 = vld [vmem:[#allocation7 + $0x138] sm:$0xff] }
  0x83   : > { %v621_v1 = vpack.c.bf16 %v254_v61, %v252_v60  ;;  %v623_v2 = vpack.c.bf16 %v259_v63, %v257_v62  ;;  %v256_v3 = vld [vmem:[#allocation7 + $0x120] sm:$0xff]  ;;  %v258_v4 = vld [vmem:[#allocation7 + $0x130] sm:$0xff]  ;;  %v261_v5 = vld [vmem:[#allocation7 + $0x148] sm:$0xff] }
  0x84   : > { %602 = vmatpush1.bf16.msra.mxu1 %v601_v26  ;;  %v263_v6 = vld [vmem:[#allocation7 + $0x158] sm:$0xff]  ;;  %v625_v7 = vpack.c.bf16 %v258_v4, %v256_v3  ;;  %v260_v8 = vld [vmem:[#allocation7 + $0x140] sm:$0xff]  ;;  %v262_v9 = vld [vmem:[#allocation7 + $0x150] sm:$0xff] }
  0x85   : > { %604 = vmatprep.subr.bf16.mxu1 %v603_v27  ;;  %578 = vmatmul.mubr.msk.f32.vlgmr.msra.gmra.mrb[0].mxu0 %vm365_vm0, %v218_v51  ;;  %v265_v10 = vld [vmem:[#allocation7 + $0x168] sm:$0xff]  ;;  %v267_v11 = vld [vmem:[#allocation7 + $0x178] sm:$0xff]  ;;  %v629_v12 = vpack.c.bf16 %v262_v9, %v260_v8  ;;  %v264_v14 = vld [vmem:[#allocation7 + $0x160] sm:$0xff] }
  0x86   : > { %442 = vmatprep.mubr.f32.mxu0 %v902_v0  ;;  %v627_v0 = vpack.c.bf16 %v263_v6, %v261_v5  ;;  %v631_v13 = vpack.c.bf16 %v267_v11, %v265_v10  ;;  %v266_v15 = vld [vmem:[#allocation7 + $0x170] sm:$0xff]  ;;  %v269_v16 = vld [vmem:[#allocation7 + $0x188] sm:$0xff]  ;;  %v271_v17 = vld [vmem:[#allocation7 + $0x198] sm:$0xff] }
  0x87   : > { %v633_v18 = vpack.c.bf16 %v266_v15, %v264_v14  ;;  %v635_v19 = vpack.c.bf16 %v271_v17, %v269_v16  ;;  %v268_v20 = vld [vmem:[#allocation7 + $0x180] sm:$0xff]  ;;  %v270_v21 = vld [vmem:[#allocation7 + $0x190] sm:$0xff]  ;;  %v273_v22 = vld [vmem:[#allocation7 + $0x1a8] sm:$0xff] }
  0x88   : > { %606 = vmatpush1.bf16.msra.mxu1 %v605_v32  ;;  %v275_v23 = vld [vmem:[#allocation7 + $0x1b8] sm:$0xff]  ;;  %v637_v24 = vpack.c.bf16 %v270_v21, %v268_v20  ;;  %v272_v26 = vld [vmem:[#allocation7 + $0x1a0] sm:$0xff]  ;;  %v274_v27 = vld [vmem:[#allocation7 + $0x1b0] sm:$0xff] }
  0x89   : > { %608 = vmatprep.subr.bf16.mxu1 %v607_v33  ;;  %579 = vmatmul.mubr.msk.f32.gmra.mrb[2].mxu0 %vm365_vm0, %v219_v58  ;;  %v639_v25 = vpack.c.bf16 %v275_v23, %v273_v22  ;;  %v277_v28 = vld [vmem:[#allocation7 + $0x1c8] sm:$0xff]  ;;  %v279_v29 = vld [vmem:[#allocation7 + $0x1d8] sm:$0xff]  ;;  %v641_v30 = vpack.c.bf16 %v274_v27, %v272_v26  ;;  %v276_v32 = vld [vmem:[#allocation7 + $0x1c0] sm:$0xff] }
  0x8a   : > { %v643_v31 = vpack.c.bf16 %v279_v29, %v277_v28  ;;  %v278_v33 = vld [vmem:[#allocation7 + $0x1d0] sm:$0xff]  ;;  %v281_v34 = vld [vmem:[#allocation7 + $0x1e8] sm:$0xff]  ;;  %v283_v35 = vld [vmem:[#allocation7 + $0x1f8] sm:$0xff] }
  0x8b   : > { %v645_v36 = vpack.c.bf16 %v278_v33, %v276_v32  ;;  %v647_v37 = vpack.c.bf16 %v283_v35, %v281_v34  ;;  %v282_v39 = vld [vmem:[#allocation7 + $0x1f0] sm:$0xff] }
  0x8c   : > { %610 = vmatpush1.bf16.msra.mxu1 %v609_v38  ;;  %v280_v38 = vld [vmem:[#allocation7 + $0x1e0] sm:$0xff] }
  0x8d   : > { %612 = vmatprep.subr.bf16.mxu1 %v611_v42  ;;  %v649_v40 = vpack.c.bf16 %v282_v39, %v280_v38 }
  0x90   : > { %614 = vmatpush1.bf16.msra.mxu1 %v613_v50 }
  0x91   : > { %616 = vmatprep.subr.bf16.mxu1 %v615_v52 }
  0x94   : > { %618 = vmatpush1.bf16.msra.mxu1 %v617_v57 }
  0x95   : > { %620 = vmatprep.subr.bf16.mxu1 %v619_v59 }
  0x98   : > { %622 = vmatpush1.bf16.msra.mxu1 %v621_v1 }
  0x99   : > { %624 = vmatprep.subr.bf16.mxu1 %v623_v2 }
  0x9c   : > { %626 = vmatpush1.bf16.msra.mxu1 %v625_v7 }
  0x9d   : > { %628 = vmatprep.subr.bf16.mxu1 %v627_v0 }
  0xa0   : > { %630 = vmatpush1.bf16.msra.mxu1 %v629_v12 }
  0xa1   : > { %632 = vmatprep.subr.bf16.mxu1 %v631_v13 }
  0xa4   : > { %634 = vmatpush1.bf16.msra.mxu1 %v633_v18 }
  0xa5   : > { %636 = vmatprep.subr.bf16.mxu1 %v635_v19 }
  0xa8   : > { %638 = vmatpush1.bf16.msra.mxu1 %v637_v24 }
  0xa9   : > { %640 = vmatprep.subr.bf16.mxu1 %v639_v25 }
  0xac   : > { %642 = vmatpush1.bf16.msra.mxu1 %v641_v30 }
  0xad   : > { %644 = vmatprep.subr.bf16.mxu1 %v643_v31 }
  0xb0   : > { %646 = vmatpush1.bf16.msra.mxu1 %v645_v36 }
  0xb1   : > { %648 = vmatprep.subr.bf16.mxu1 %v647_v37 }
  0xb4   : > { %650 = vmatpush1.bf16.msra.mxu1 %v649_v40 }
  0xb7   : > { %353 = vmatmul.mubr.f32.vlgmr.msra.gmra.mrb[0].mxu1 %v1124_v45 }
  0xb8   : > { %358 = vmatprep.mubr.f32.mxu1 %v1120_v41 }
  0xbb   : > { %359 = vmatmul.mubr.f32.gmra.mrb[2].mxu1 %v1127_v46 }
 0x158   : > { %v438_v42 = vpop.f32.mrb[0].mxu0 }
 0x159   : > { %v440_v43 = vpop.f32.mrb[1].mxu0 }
 0x15c   : > { %v444_v44 = vpop.f32.mrb[2].mxu0 }
 0x15d   : > { %v446_v47 = vpop.f32.mrb[3].mxu0 }
 0x18a   : > { %v354_v48 = vpop.f32.mrb[0].mxu1 }
 0x18b   : > { %v439_v49 = vadd.f32 %v438_v42, %v354_v48  ;;  %v356_v50 = vpop.f32.mrb[1].mxu1 }
 0x18c   : > { %v441_v51 = vadd.f32 %v440_v43, %v356_v50 }
 0x18d   : > { %v449_v52 = vmax.f32 %v439_v49, 0.0 }
 0x18e   : > { %v450_v53 = vmax.f32 %v441_v51, 0.0  ;;  %v360_v54 = vpop.f32.mrb[2].mxu1 }
 0x18f   : > { %453 = vst [vmem:[%s217_s23] sm:$0xff] %v449_v52  ;;  %v445_v41 = vadd.f32 %v444_v44, %v360_v54  ;;  %v362_v45 = vpop.f32.mrb[3].mxu1 }
 0x190   : > { %454 = vst [vmem:[%s217_s23 + $0x8] sm:$0xff] %v450_v53  ;;  %v447_v46 = vadd.f32 %v446_v47, %v362_v45 }
 0x191   : > { %v451_v55 = vmax.f32 %v445_v41, 0.0 }
 0x192   : > { %v452_v56 = vmax.f32 %v447_v46, 0.0 }
 0x193   : > { %455 = vst [vmem:[%s217_s23 + $0x10] sm:$0xff] %v451_v55 }
 0x194   : > { %456 = vst [vmem:[%s217_s23 + $0x18] sm:$0xff] %v452_v56 }
 0x195   : > { %832 = shalt.err (!%p829_p13)
}
 0x196   : > { %s833_s11 = scalar_lea.hbm %s1144_s8, 512  ;;  %s837_s5 = scalar_lea.hbm %s1193_s3, 1024 }
 0x197   : > { %p834_p6 = scmp.ne.s32.totalorder %s1144_s8, %s833_s11  ;;  %p838_p8 = scmp.lt.u32.totalorder %s1144_s8, %s1193_s3 }
 0x198   : > { %p839_p7 = scmp.lt.u32.totalorder %s837_s5, %s833_s11  ;;  %p841_p10 = scmp.lt.u32.totalorder %s833_s11, %s1144_s8 }
 0x199   : > { %p835_p11 = pnand %p834_p6, %p1219_p1 }
 0x19a   : > { %p840_p9 = por %p839_p7, %p838_p8 }
 0x19b   : > { %p836_p3 = pneg %p835_p11 }
 0x19c   : > { %p842_p4 = por %p841_p10, %p840_p9 }
 0x19e   : > { %p843_p0 = pnand %p842_p4, %p836_p3 }
 0x1a0   : > { %846 = shalt.err (!%p843_p0)
}
 0x1a1   : > { %s904_s20 = smov 256   ;;  %s905_s17 = smov 16  }
 0x1a2   : > { %669 = dma.vmem_to_hbm [thread:$0]  (%p1219_p1), %s1139_s26, 512, %s1144_s8, %s1148_s16, %s904_s20, %s904_s20, %s905_s17  }
 0x1a3 PF: > { %s486_s23 = sand.u32 1, %s881_s12   ;;  %p1220_p2 = scmp.ne.s32.totalorder %s1204_s25, 0 }
 0x1a4   : > { %p1221_p5 = scmp.ge.s32.totalorder %s893_s15, 2  ;;  %s487_s29 = scalar_lea.sflag [#allocation4], %s486_s23 }
 0x1a6   : > { %p683_p12 = pnand %p1221_p5, %p1220_p2 }
 0x1a8   : > { %876 = dma.done.wait (!%p683_p12), %s487_s29, 512  }
 0x1a9   : > { %878 = vsyncadd (!%p683_p12), %s487_s29, 4294966784  ;;  %p17_p13 = scmp.ge.s32.totalorder %s951_s18, 4   ;;  %s1222_s12 = smov %s885_s13 }
 0x1aa   : > { %s1223_s13 = smov %s889_s14  ;;  %s1224_s14 = smov %s963_s21 }
 0x1ab   : > { %s1225_s15 = smov %s951_s18  ;;  %19 = sbr.rel (!%p17_p13) target bundleno = 6 (0x6), region = 86 }
 0x1b2   :  { %492 = vsyncpa [#allocation3], 1 }
 0x1b3   :  { %494 = vsyncpa [#allocation3 + $0x1], 1 }
 0x1b4   :  { %495 = vsyncpa [#allocation6], 1 }
 0x1b5   :  { %497 = vsyncpa [#allocation6 + $0x1], 1 }
 0x1b6   :  { %498 = vsyncpa [#allocation4], 1 }
 0x1b7   :  { %500 = vsyncpa [#allocation4 + $0x1], 1 }

</bundles_post_ra>
